<compile_context>
chip_gen: v5e
topology: v5e:2x2
jax: 0.10.0
libtpu: 0.0.40
codegen_flags: <defaults>
</compile_context>

<pallas_src>
import functools

import jax
import jax.numpy as jnp
from jax.experimental import pallas as pl
from jax.experimental.pallas import tpu as pltpu

_LANE = 128


def _round_up(n, m):
    return ((n + m - 1) // m) * m


def _tpu_generation_params():
    """Returns (block_budget_bytes, vmem_cap_bytes, multi_core)."""
    vmem_phys = 128 << 20                       # v5e / v6e default
    try:
        info = pltpu.get_tpu_info()
        v = getattr(info, "vmem_capacity_bytes", None)
        if v:
            vmem_phys = int(v)
    except Exception:
        pass
    if vmem_phys <= (96 << 20):                 # v7x-like: 64 MiB per TC, 2 TCs/chip
        return 28 << 20, 48 << 20, True
    return 48 << 20, 100 << 20, False           # v5e / v6e: 128 MiB, 1 TC


# ---------------------------------- kernels ----------------------------------

def _ca_fused_kernel(x_ref, w1t_ref, w2t_ref, o_ref, *, inv_hw):
    """Single pass: one block = (Bt, C, HW) covering Bt batch elements."""
    xf = x_ref[...].astype(jnp.float32)                    # (Bt, C, HW)
    bt = xf.shape[0]

    avg = jnp.sum(xf, axis=-1) * inv_hw                    # (Bt, C)
    mx = jnp.max(xf, axis=-1)                              # (Bt, C)

    # Shared fc on the stacked pooled vectors: one matmul pair per block.
    pooled = jnp.concatenate([avg, mx], axis=0)            # (2*Bt, C)
    h = jnp.maximum(
        jnp.dot(pooled, w1t_ref[...], preferred_element_type=jnp.float32), 0.0)
    logits = jnp.dot(h, w2t_ref[...], preferred_element_type=jnp.float32)
    scale = jax.nn.sigmoid(logits[:bt] + logits[bt:])      # (Bt, C) f32

    # Broadcast-multiply in the storage dtype (bf16 VALU packing on v6e/v7x,
    # no f32 copy of the whole block kept live across the matmul section).
    o_ref[...] = (scale.astype(o_ref.dtype)[:, :, None] * x_ref[...]
                  ).astype(o_ref.dtype)


def _ca_pool_kernel(x_ref, pooled_ref, sum_acc, max_acc, *, hw, tile):
    """Two-pass / pass 1: per-channel sum+max over HW tiles.

    The iota/compare/select mask is only applied on the last (possibly ragged)
    tile, keeping the bulk of the read-only stream on the HBM roofline.
    """
    t = pl.program_id(1)
    last = pl.num_programs(1) - 1

    @pl.when(t == 0)
    def _():
        sum_acc[...] = jnp.zeros_like(sum_acc)
        max_acc[...] = jnp.full_like(max_acc, -jnp.inf)

    x = x_ref[...].astype(jnp.float32)                     # (C, tile)

    @pl.when(t < last)
    def _():                                               # interior tiles: no mask
        sum_acc[...] += jnp.sum(x, axis=-1, keepdims=True)
        max_acc[...] = jnp.maximum(max_acc[...],
                                   jnp.max(x, axis=-1, keepdims=True))

    @pl.when(t == last)
    def _():                                               # last tile: mask pads
        lane = jax.lax.broadcasted_iota(jnp.int32, (1, tile), 1) + t * tile
        valid = lane < hw
        s = jnp.sum(jnp.where(valid, x, 0.0), axis=-1, keepdims=True)
        m = jnp.max(jnp.where(valid, x, -jnp.inf), axis=-1, keepdims=True)
        pooled_ref[:, 0:1] = (sum_acc[...] + s) * (1.0 / hw)
        pooled_ref[:, 1:2] = jnp.maximum(max_acc[...], m)


def _ca_apply_kernel(scale_ref, x_ref, o_ref):
    """Two-pass / pass 2: pure streaming out = scale * x (both grid axes parallel)."""
    o_ref[...] = (scale_ref[...] * x_ref[...]).astype(o_ref.dtype)


# ---------------------------------- wrapper -----------------------------------

def channel_attention(x_nchw, w1, w2, *, block_budget_bytes=None):
    """CBAM channel attention. x: (B, C, H, W); w1: (C//r, C); w2: (C, C//r).

    The storage dtype of x is preserved (pass bf16 for ~2x less HBM traffic);
    pooling and fc math is f32, the final broadcast-multiply is in the storage
    dtype.
    """
    B, C, H, W = x_nchw.shape
    Cr = w1.shape[0]
    HW = H * W
    dtype = x_nchw.dtype
    itemsize = jnp.dtype(dtype).itemsize
    w1 = w1.astype(jnp.float32)
    w2 = w2.astype(jnp.float32)

    budget, vmem_cap, multi_core = _tpu_generation_params()
    if block_budget_bytes is not None:
        budget = int(block_budget_bytes)

    x_flat = x_nchw.reshape(B, C, HW)

    # VMEM footprint estimate (internal layout pads to sublane/lane multiples).
    hw128 = _round_up(HW, _LANE)
    c_pad = _round_up(C, 16)
    blk_elems = c_pad * hw128
    per_batch_bytes = blk_elems * itemsize
    f32_extra = blk_elems * 4 if itemsize < 4 else 0       # upcast temp (bf16 only)
    w_bytes = 2 * 4 * (int(w1.size) + int(w2.size))
    headroom = 2 << 20

    def need(bt):                                           # 2x in + 2x out dbl-buf
        return 4 * bt * per_batch_bytes + bt * f32_extra + w_bytes

    if need(1) <= budget:
        # -------- single pass: one (Bt, C, HW) block per grid step -----------
        bt = 1
        for cand in range(min(B, 256), 0, -1):              # ragged tail allowed
            if need(cand) > budget:
                continue
            if multi_core and B >= 2 and pl.cdiv(B, cand) < 2:
                continue                                     # keep >=2 steps on v7x
            bt = cand
            break
        nb = pl.cdiv(B, bt)
        vmem_limit = int(min(vmem_cap, max(need(bt) + headroom, 32 << 20)))

        kernel = functools.partial(_ca_fused_kernel, inv_hw=1.0 / HW)
        out_flat = pl.pallas_call(
            kernel,
            out_shape=jax.ShapeDtypeStruct((B, C, HW), dtype),
            grid_spec=pltpu.PrefetchScalarGridSpec(
                num_scalar_prefetch=0,
                grid=(nb,),
                in_specs=[
                    pl.BlockSpec((bt, C, HW), lambda b: (b, 0, 0)),
                    pl.BlockSpec((C, Cr), lambda b: (0, 0)),   # W1^T (resident)
                    pl.BlockSpec((Cr, C), lambda b: (0, 0)),   # W2^T (resident)
                ],
                out_specs=pl.BlockSpec((bt, C, HW), lambda b: (b, 0, 0)),
            ),
            compiler_params=pltpu.CompilerParams(
                dimension_semantics=("parallel",),
                vmem_limit_bytes=vmem_limit,
            ),
        )(x_flat, w1.T, w2.T)
        return out_flat.reshape(B, C, H, W)

    # -------- two-pass fallback: HW-tiled pooling, then HW-tiled apply -------
    per_lane_bytes = 4 * c_pad * itemsize + (4 * c_pad if itemsize < 4 else 0)
    tile = max(_LANE, (budget // per_lane_bytes // _LANE) * _LANE)
    if tile >= HW:
        tile = HW                                   # full-dim block, no raggedness
    n_t = pl.cdiv(HW, tile)
    vmem_limit = int(min(vmem_cap,
                         max(per_lane_bytes * tile + headroom, 32 << 20)))

    # Pass 1: pooled[b] = [avg, max] per channel -> (B, C, 2) f32.
    # (Deeper pipeline_mode=pl.Buffered(3) on x would be a small extra win; kept
    #  at the default depth for portability.)
    pool_kernel = functools.partial(_ca_pool_kernel, hw=HW, tile=tile)
    pooled = pl.pallas_call(
        pool_kernel,
        out_shape=jax.ShapeDtypeStruct((B, C, 2), jnp.float32),
        grid_spec=pltpu.PrefetchScalarGridSpec(
            num_scalar_prefetch=0,
            grid=(B, n_t),
            in_specs=[pl.BlockSpec((None, C, tile), lambda b, t: (b, 0, t))],
            out_specs=pl.BlockSpec((None, C, 2), lambda b, t: (b, 0, 0)),
            scratch_shapes=[pltpu.VMEM((C, 1), jnp.float32),
                            pltpu.VMEM((C, 1), jnp.float32)],
        ),
        compiler_params=pltpu.CompilerParams(
            dimension_semantics=("parallel", "arbitrary"),
            vmem_limit_bytes=vmem_limit,
        ),
    )(x_flat)

    # Tiny fc + sigmoid in plain JAX between the passes (removes the per-batch
    # MXU bubble and the cross-tile serialization from the apply pass, so both
    # of its grid axes can be "parallel" -> both v7x TCs even when B == 1).
    avg = pooled[:, :, 0]
    mx = pooled[:, :, 1]

    def fc(v):                                      # v: (B, C)
        return jnp.maximum(v @ w1.T, 0.0) @ w2.T

    scale = jax.nn.sigmoid(fc(avg) + fc(mx)).astype(dtype)[:, :, None]  # (B, C, 1)

    # Pass 2: out = scale * x, pure streaming, tiled over (B, HW).
    out_flat = pl.pallas_call(
        _ca_apply_kernel,
        out_shape=jax.ShapeDtypeStruct((B, C, HW), dtype),
        grid_spec=pltpu.PrefetchScalarGridSpec(
            num_scalar_prefetch=0,
            grid=(B, n_t),
            in_specs=[
                pl.BlockSpec((None, C, 1), lambda b, t: (b, 0, 0)),
                pl.BlockSpec((None, C, tile), lambda b, t: (b, 0, t)),
            ],
            out_specs=pl.BlockSpec((None, C, tile), lambda b, t: (b, 0, t)),
        ),
        compiler_params=pltpu.CompilerParams(
            dimension_semantics=("parallel", "parallel"),
            vmem_limit_bytes=vmem_limit,
        ),
    )(scale, x_flat)
    return out_flat.reshape(B, C, H, W)


def channel_attention_ref(x, w1, w2):
    """Pure-JAX reference mirroring the PyTorch forward."""
    avg = jnp.mean(x, axis=(2, 3))                      # (B, C)
    mx = jnp.max(x, axis=(2, 3))                        # (B, C)

    def fc(v):  # v: (B, C)
        h = jnp.maximum(v @ w1.T, 0.0)                  # (B, Cr)
        return h @ w2.T                                 # (B, C)

    scale = jax.nn.sigmoid(fc(avg) + fc(mx))            # (B, C)
    return scale[:, :, None, None] * x


if __name__ == "__main__":
    def check(name, x, w1, w2, atol, rtol, **kw):
        out = jax.block_until_ready(channel_attention(x, w1, w2, **kw))
        ref = channel_attention_ref(x.astype(jnp.float32), w1, w2)
        assert out.shape == x.shape, name
        err = jnp.max(jnp.abs(out.astype(jnp.float32) - ref))
        assert jnp.allclose(out.astype(jnp.float32), ref, atol=atol, rtol=rtol), (
            f"{name}: max abs err {err}")

    # Case 1: C=32, reduction=16, HW=256 (lane aligned).
    B, C, H, W, r = 2, 32, 16, 16, 16
    kx, k1, k2 = jax.random.split(jax.random.PRNGKey(0), 3)
    x = jax.random.normal(kx, (B, C, H, W), dtype=jnp.float32)
    w1 = jax.random.normal(k1, (C // r, C), dtype=jnp.float32) * 0.1
    w2 = jax.random.normal(k2, (C, C // r), dtype=jnp.float32) * 0.1
    check("single-pass f32", x, w1, w2, 1e-5, 1e-5)
    # Same inputs forced through the two-pass (HW-tiled) fallback path.
    check("two-pass f32", x, w1, w2, 1e-5, 1e-5, block_budget_bytes=64 * 1024)
    # bf16 storage (reductions/fc still f32): ~2x less HBM traffic.
    check("single-pass bf16", x.astype(jnp.bfloat16), w1, w2, 3e-2, 3e-2)
    check("two-pass bf16", x.astype(jnp.bfloat16), w1, w2, 3e-2, 3e-2,
          block_budget_bytes=64 * 1024)

    # Case 2: HW=100 (not 128-aligned -> ragged lane tiles, no HBM pad), odd B.
    B, C, H, W, r = 3, 48, 10, 10, 16
    kx, k1, k2 = jax.random.split(jax.random.PRNGKey(1), 3)
    x = jax.random.normal(kx, (B, C, H, W), dtype=jnp.float32)
    w1 = jax.random.normal(k1, (C // r, C), dtype=jnp.float32) * 0.1
    w2 = jax.random.normal(k2, (C, C // r), dtype=jnp.float32) * 0.1
    check("single-pass unaligned f32", x, w1, w2, 1e-5, 1e-5)
    # Budget that forces Bt=2 with B=3 -> ragged batch tail on the last block.
    check("single-pass ragged-batch f32", x, w1, w2, 1e-5, 1e-5,
          block_budget_bytes=256 * 1024)
    check("two-pass unaligned f32", x, w1, w2, 1e-5, 1e-5,
          block_budget_bytes=16 * 1024)

    print("KERNEL_OK")
</pallas_src>

<mosaic_0001>
module attributes {stable_mosaic.version = 11 : i64} {
  func.func @_ca_fused_kernel(%arg0: i32, %arg1: memref<2x32x256xf32, #tpu.memory_space<vmem>>, %arg2: memref<32x2xf32, #tpu.memory_space<vmem>>, %arg3: memref<2x32xf32, #tpu.memory_space<vmem>>, %arg4: memref<2x32x256xf32, #tpu.memory_space<vmem>>) attributes {dimension_semantics = [#tpu.dimension_semantics<parallel>], iteration_bounds = array<i64: 1>, scalar_prefetch = 0 : i64, scratch_operands = 0 : i64, tpu.core_type = #tpu.core_type<tc>, window_params = [{transform_indices = @transform_0, window_bounds = array<i64: 2, 32, 256>}, {pipeline_mode = #tpu.pipeline_mode<synchronous>, transform_indices = @transform_1, window_bounds = array<i64: 32, 2>}, {pipeline_mode = #tpu.pipeline_mode<synchronous>, transform_indices = @transform_2, window_bounds = array<i64: 2, 32>}, {transform_indices = @transform_3, window_bounds = array<i64: 2, 32, 256>}]} {
    %c0 = arith.constant 0 : index
    %c0_0 = arith.constant 0 : index
    %c0_1 = arith.constant 0 : index
    %0 = vector.load %arg1[%c0, %c0_0, %c0_1] : memref<2x32x256xf32, #tpu.memory_space<vmem>>, vector<2x32x256xf32>
    %cst = arith.constant dense<0.000000e+00> : vector<2x32xf32>
    %1 = vector.multi_reduction <add>, %0, %cst [2] : vector<2x32x256xf32> to vector<2x32xf32>
    %cst_2 = arith.constant 3.906250e-03 : f32
    %2 = vector.broadcast %cst_2 : f32 to vector<2x32xf32>
    %3 = arith.mulf %1, %2 : vector<2x32xf32>
    %cst_3 = arith.constant dense<0xFF800000> : vector<2x32xf32>
    %4 = vector.multi_reduction <maximumf>, %0, %cst_3 [2] : vector<2x32x256xf32> to vector<2x32xf32>
    %5 = tpu.concatenate %3, %4 in 0 : vector<2x32xf32>, vector<2x32xf32> -> vector<4x32xf32>
    %c0_4 = arith.constant 0 : index
    %c0_5 = arith.constant 0 : index
    %6 = vector.load %arg2[%c0_4, %c0_5] : memref<32x2xf32, #tpu.memory_space<vmem>>, vector<32x2xf32>
    %cst_6 = arith.constant dense<0.000000e+00> : vector<4x2xf32>
    %7 = tpu.matmul %5, %6, %cst_6 {dimension_numbers = #tpu.dot_dimension_numbers<[1], [0], [0], [1], [0, 0, 1, 1], [], []>} : vector<4x32xf32>, vector<32x2xf32>, vector<4x2xf32> -> vector<4x2xf32>
    %cst_7 = arith.constant 0.000000e+00 : f32
    %8 = vector.broadcast %cst_7 : f32 to vector<4x2xf32>
    %9 = arith.maximumf %7, %8 : vector<4x2xf32>
    %c0_8 = arith.constant 0 : index
    %c0_9 = arith.constant 0 : index
    %10 = vector.load %arg3[%c0_8, %c0_9] : memref<2x32xf32, #tpu.memory_space<vmem>>, vector<2x32xf32>
    %cst_10 = arith.constant dense<0.000000e+00> : vector<4x32xf32>
    %11 = tpu.matmul %9, %10, %cst_10 {dimension_numbers = #tpu.dot_dimension_numbers<[1], [0], [0], [1], [0, 0, 1, 1], [], []>} : vector<4x2xf32>, vector<2x32xf32>, vector<4x32xf32> -> vector<4x32xf32>
    %12 = vector.extract_strided_slice %11 {offsets = [0, 0], sizes = [2, 32], strides = [1, 1]} : vector<4x32xf32> to vector<2x32xf32>
    %13 = vector.extract_strided_slice %11 {offsets = [2, 0], sizes = [2, 32], strides = [1, 1]} : vector<4x32xf32> to vector<2x32xf32>
    %14 = arith.addf %12, %13 : vector<2x32xf32>
    %15 = arith.negf %14 : vector<2x32xf32>
    %16 = math.exp %15 : vector<2x32xf32>
    %cst_11 = arith.constant 1.000000e+00 : f32
    %17 = vector.broadcast %cst_11 : f32 to vector<2x32xf32>
    %18 = arith.addf %17, %16 : vector<2x32xf32>
    %19 = arith.divf %17, %18 : vector<2x32xf32>
    %20 = vector.shape_cast %19 : vector<2x32xf32> to vector<2x32x1xf32>
    %c0_12 = arith.constant 0 : index
    %c0_13 = arith.constant 0 : index
    %c0_14 = arith.constant 0 : index
    %21 = vector.load %arg1[%c0_12, %c0_13, %c0_14] : memref<2x32x256xf32, #tpu.memory_space<vmem>>, vector<2x32x256xf32>
    %22 = vector.broadcast %20 : vector<2x32x1xf32> to vector<2x32x256xf32>
    %23 = arith.mulf %22, %21 : vector<2x32x256xf32>
    %c0_15 = arith.constant 0 : index
    %c0_16 = arith.constant 0 : index
    %c0_17 = arith.constant 0 : index
    %24 = vector.load %arg4[%c0_15, %c0_16, %c0_17] : memref<2x32x256xf32, #tpu.memory_space<vmem>>, vector<2x32x256xf32>
    tpu.vector_store %arg4[%c0_15, %c0_16, %c0_17], %23 {strides = array<i32>} : memref<2x32x256xf32, #tpu.memory_space<vmem>>, vector<2x32x256xf32>,
    return
  }
  func.func @transform_0(%arg0: i32) -> (i32, i32, i32) {
    %c0_i32 = arith.constant 0 : i32
    %c0_i32_0 = arith.constant 0 : i32
    %c0_i32_1 = arith.constant 0 : i32
    return %arg0, %c0_i32, %c0_i32_0 : i32, i32, i32
  }
  func.func @transform_1(%arg0: i32) -> (i32, i32) {
    %c0_i32 = arith.constant 0 : i32
    %c0_i32_0 = arith.constant 0 : i32
    %c0_i32_1 = arith.constant 0 : i32
    return %c0_i32, %c0_i32_0 : i32, i32
  }
  func.func @transform_2(%arg0: i32) -> (i32, i32) {
    %c0_i32 = arith.constant 0 : i32
    %c0_i32_0 = arith.constant 0 : i32
    %c0_i32_1 = arith.constant 0 : i32
    return %c0_i32, %c0_i32_0 : i32, i32
  }
  func.func @transform_3(%arg0: i32) -> (i32, i32, i32) {
    %c0_i32 = arith.constant 0 : i32
    %c0_i32_0 = arith.constant 0 : i32
    %c0_i32_1 = arith.constant 0 : i32
    return %arg0, %c0_i32, %c0_i32_0 : i32, i32, i32
  }
}

</mosaic_0001>

<bundles_post_ra>
// kernel: tpu_custom_call.1
= control target key start
LH: loop header
LB: loop body
LE: loop exit
PB: predicated region body
PF: predicated region fallthrough
CT: control target
= control target key end

     0   :  { %8 = vsyncpa [#allocation3], 0  ;;  %s561_s0 = inlined_call_operand.hbm [shape: f32[2,32,256], index: 0, kind: input, shape index: {}]   ;;  %s562_s1 = inlined_call_operand.vmem [shape: f32[32,2], index: 1, kind: input, shape index: {}]   ;;  %s563_s2 = inlined_call_operand.vmem [shape: f32[2,32], index: 2, kind: input, shape index: {}]   ;;  %s564_s3 = inlined_call_operand.hbm [shape: f32[2,32,256], index: 3, kind: output, shape index: {}]  }
   0x1   :  { %9 = vsyncpa [#allocation4], 0  ;;  %s14_s14 = sshll.u32 %s561_s0, 4  ;;  %s416_s15 = smov [#allocation2]   ;;  %s15_s14 = int_to_ptr.hbm [resolvable:$true] %s14_s14 }
   0x2   :  { %s16_s16 = sshll.u32 %s416_s15, 4  ;;  %s417_s17 = smov 256   ;;  %s17_s16 = int_to_ptr.vmem [resolvable:$true] %s16_s16 }
   0x3   :  { %s418_s18 = smov 16  }
   0x4   :  { %22 = dma.hbm_to_vmem [thread:$0]  %s15_s14, 2048, %s17_s16, [#allocation3], %s417_s17, %s417_s17, %s418_s18  }
   0x5   :  { %412 = dma.done.wait [#allocation3], 2048  }
   0x6   :  { %413 = vsyncadd [#allocation3], 4294965248  ;;  %v446_v0 = vld [vmem:[#allocation2 + $0x40] sm:$0xff]  ;;  %v448_v1 = vld [vmem:[#allocation2 + $0x48] sm:$0xff]  ;;  %v111_v45 = vlaneseq  ;;  %vm116_vm0 = vcmask 130112   ;;  %vm120_vm1 = vcmask 195712  }
   0x7   :  { %v450_v2 = vld [vmem:[#allocation2] sm:$0xff]  ;;  %v59_v3 = vadd.f32 %v448_v1, %v446_v0  ;;  %v454_v4 = vld [vmem:[#allocation2 + $0x8] sm:$0xff]  ;;  %v464_v9 = vld [vmem:[#allocation2 + $0x50] sm:$0xff]  ;;  %v91_v25 = vmax.f32 %v446_v0, %v448_v1  ;;  %vm124_vm2 = vcmask 261312   ;;  %vm133_vm3 = vcmask 1041409   ;;  %s331_s30 = sshll.u32 %s564_s3, 4  ;;  %s332_s30 = int_to_ptr.hbm [resolvable:$true] %s331_s30 }
   0x8   :  { %v456_v5 = vld [vmem:[#allocation2 + $0x20] sm:$0xff]  ;;  %v458_v6 = vld [vmem:[#allocation2 + $0x28] sm:$0xff]  ;;  %v47_v7 = vadd.f32 %v454_v4, %v450_v2  ;;  %v466_v10 = vld [vmem:[#allocation2 + $0x58] sm:$0xff]  ;;  %v79_v24 = vmax.f32 %v450_v2, %v454_v4  ;;  %v112_v49 = vand.u32 127, %v111_v45  ;;  %vm158_vm4 = vcmask 1043459  }
   0x9   :  { %v53_v8 = vadd.f32 %v458_v6, %v456_v5  ;;  %60 = vadd.xlane.f32.xlu1 %v59_v3  ;;  %v468_v11 = vld [vmem:[#allocation2 + $0x10] sm:$0xff]  ;;  %v470_v12 = vld [vmem:[#allocation2 + $0x18] sm:$0xff]  ;;  %v472_v13 = vld [vmem:[#allocation2 + $0x60] sm:$0xff]  ;;  %v62_v15 = vadd.f32 %v466_v10, %v464_v9  ;;  %v94_v27 = vmax.f32 %v464_v9, %v466_v10  ;;  %v85_v29 = vmax.f32 %v456_v5, %v458_v6 }
   0xa   :  { %48 = vadd.xlane.f32.xlu0 %v47_v7  ;;  %v474_v14 = vld [vmem:[#allocation2 + $0x68] sm:$0xff]  ;;  %v50_v16 = vadd.f32 %v470_v12, %v468_v11  ;;  %v482_v18 = vld [vmem:[#allocation2 + $0x70] sm:$0xff]  ;;  %v484_v19 = vld [vmem:[#allocation2 + $0x78] sm:$0xff]  ;;  %v82_v26 = vmax.f32 %v468_v11, %v470_v12  ;;  %v114_v51 = vadd.s32 4294967288, %v112_v49  ;;  %v118_v55 = vadd.s32 4294967280, %v112_v49 }
   0xb   :  { %54 = vadd.xlane.f32.xlu2 %v53_v8  ;;  %v65_v17 = vadd.f32 %v474_v14, %v472_v13  ;;  %v486_v20 = vld [vmem:[#allocation2 + $0x30] sm:$0xff]  ;;  %v488_v21 = vld [vmem:[#allocation2 + $0x38] sm:$0xff]  ;;  %v68_v22 = vadd.f32 %v484_v19, %v482_v18  ;;  %v97_v28 = vmax.f32 %v472_v13, %v474_v14  ;;  %v100_v31 = vmax.f32 %v482_v18, %v484_v19  ;;  %v164_v40 = vld [vmem:[%s562_s1 + $0x8] sm:$0xff] }
   0xc   :  { %v56_v23 = vadd.f32 %v488_v21, %v486_v20  ;;  %v88_v30 = vmax.f32 %v486_v20, %v488_v21  ;;  %v166_v35 = vld [vmem:[%s562_s1 + $0x18] sm:$0xff]  ;;  %v165_v39 = vld [vmem:[%s562_s1 + $0x10] sm:$0xff]  ;;  %v163_v41 = vld [vmem:[%s562_s1] sm:$0xff]  ;;  %v122_v59 = vadd.s32 4294967272, %v112_v49  ;;  %vm161_vm5 = vcmask 1041408  }
   0xd   :  { %183 = vmatpush.msra.mxu0 %v166_v35  ;;  %vm167_vm6 = vcmask 261120   ;;  %vm193_vm7 = vcmask 15360  }
   0xf   :  { %184 = vmatpush.msra.mxu0 %v165_v39 }
  0x11   :  { %63 = vadd.xlane.f32.xlu1 %v62_v15  ;;  %185 = vmatpush.msra.mxu0 %v164_v40 }
  0x12   :  { %51 = vadd.xlane.f32.xlu0 %v50_v16 }
  0x13   :  { %66 = vadd.xlane.f32.xlu2 %v65_v17  ;;  %186 = vmatpush.msra.mxu0 %v163_v41 }
  0x19   :  { %69 = vadd.xlane.f32.xlu1 %v68_v22 }
  0x1a   :  { %57 = vadd.xlane.f32.xlu0 %v56_v23 }
  0x1b   :  { %80 = vmax.xlane.f32.xlu2 %v79_v24 }
  0x21   :  { %92 = vmax.xlane.f32.xlu1 %v91_v25 }
  0x22   :  { %83 = vmax.xlane.f32.xlu0 %v82_v26 }
  0x23   :  { %95 = vmax.xlane.f32.xlu2 %v94_v27 }
  0x29   :  { %98 = vmax.xlane.f32.xlu1 %v97_v28 }
  0x2a   :  { %86 = vmax.xlane.f32.xlu0 %v85_v29 }
  0x2b   :  { %89 = vmax.xlane.f32.xlu2 %v88_v30 }
  0x32   :  { %101 = vmax.xlane.f32.xlu0 %v100_v31 }
  0x7c   :  { %v61_v32 = vpop.xlane.xlu1 %60 }
  0x7d   :  { %v49_v33 = vpop.xlane.xlu0 %48  ;;  %v75_v50 = vmul.f32 0.00390625, %v61_v32 }
  0x7e   :  { %v55_v34 = vpop.xlane.xlu2 %54  ;;  %v71_v54 = vmul.f32 0.00390625, %v49_v33 }
  0x7f   :  { %v126_v56 = vperm.slane %v75_v50, %v112_v49  ;;  %v73_v57 = vmul.f32 0.00390625, %v55_v34 }
  0x80   :  { %v113_v7 = vperm.slane %v71_v54, %v112_v49 }
  0x81   :  { %v119_v23 = vperm.slane %v73_v57, %v118_v55 }
  0x84   :  { %v64_v36 = vpop.xlane.xlu1 %63 }
  0x85   :  { %v52_v37 = vpop.xlane.xlu0 %51  ;;  %v76_v52 = vmul.f32 0.00390625, %v64_v36 }
  0x86   :  { %v67_v38 = vpop.xlane.xlu2 %66  ;;  %v72_v53 = vmul.f32 0.00390625, %v52_v37 }
  0x87   :  { %v77_v58 = vmul.f32 0.00390625, %v67_v38  ;;  %v127_v61 = vperm.slane %v76_v52, %v114_v51  ;;  %v245_v52 = vshrl.u32 %v111_v45, 7 }
  0x88   :  { %v115_v62 = vperm.slane %v72_v53, %v114_v51 }
  0x89   :  { %v129_v24 = vperm.slane %v77_v58, %v118_v55  ;;  %v128_v27 = vsel %vm116_vm0, %v127_v61, %v126_v56  ;;  %352 = vset.pattern.permute.xlu1 %v245_v52  ;;  %v258_v53 = vadd.s32 16, %v245_v52  ;;  %v252_v54 = vadd.s32 8, %v245_v52 }
  0x8a   :  { %v117_v28 = vsel %vm116_vm0, %v115_v62, %v113_v7 }
  0x8b   :  { %v130_v35 = vsel %vm120_vm1, %v129_v24, %v128_v27  ;;  %v121_v38 = vsel %vm120_vm1, %v119_v23, %v117_v28  ;;  %354 = vset.pattern.permute.xlu0 %v258_v53  ;;  %353 = vset.pattern.permute.xlu2 %v252_v54  ;;  %v264_v23 = vadd.s32 24, %v245_v52 }
  0x8c   :  { %v70_v42 = vpop.xlane.xlu1 %69 }
  0x8d   :  { %v58_v43 = vpop.xlane.xlu0 %57  ;;  %v78_v63 = vmul.f32 0.00390625, %v70_v42 }
  0x8e   :  { %v81_v44 = vpop.xlane.xlu2 %80  ;;  %v74_v3 = vmul.f32 0.00390625, %v58_v43 }
  0x8f   :  { %v144_v8 = vperm.slane %v81_v44, %v112_v49  ;;  %v131_v29 = vperm.slane %v78_v63, %v122_v59 }
  0x90   :  { %v123_v30 = vperm.slane %v74_v3, %v122_v59 }
  0x91   :  { %v132_v41 = vsel %vm124_vm2, %v131_v29, %v130_v35 }
  0x92   :  { %v125_v40 = vsel %vm124_vm2, %v123_v30, %v121_v38 }
  0x94   :  { %v93_v47 = vpop.xlane.xlu1 %92 }
  0x95   :  { %v84_v46 = vpop.xlane.xlu0 %83  ;;  %v151_v15 = vperm.slane %v93_v47, %v112_v49  ;;  %v192_v49 = vld [vmem:[%s563_s2] sm:$0x3]  ;;  %s419_s2 = smov [#allocation5]  }
  0x96   :  { %v96_v48 = vpop.xlane.xlu2 %95  ;;  %v145_v16 = vperm.slane %v84_v46, %v114_v51  ;;  %v134_v46 = vsel %vm133_vm3, %v132_v41, %v125_v40  ;;  %345 = vmatpush.msk.msra.mxu1 %vm161_vm5, %v192_v49  ;;  %s329_s27 = sshll.u32 %s419_s2, 4  ;;  %s330_s27 = int_to_ptr.vmem [resolvable:$true] %s329_s27 }
  0x97   :  { %v152_v17 = vperm.slane %v96_v48, %v114_v51 }
  0x98   :  { %v146_v32 = vsel %vm116_vm0, %v145_v16, %v144_v8 }
  0x99   :  { %v153_v33 = vsel %vm116_vm0, %v152_v17, %v151_v15 }
  0x9c   :  { %v99_v22 = vpop.xlane.xlu1 %98 }
  0x9d   :  { %v87_v60 = vpop.xlane.xlu0 %86  ;;  %v154_v31 = vperm.slane %v99_v22, %v118_v55 }
  0x9e   :  { %v147_v25 = vperm.slane %v87_v60, %v118_v55  ;;  %v90_v26 = vpop.xlane.xlu2 %89 }
  0x9f   :  { %v149_v34 = vperm.slane %v90_v26, %v122_v59  ;;  %v155_v42 = vsel %vm120_vm1, %v154_v31, %v153_v33 }
  0xa0   :  { %v148_v36 = vsel %vm120_vm1, %v147_v25, %v146_v32 }
  0xa1   :  { %v150_v43 = vsel %vm124_vm2, %v149_v34, %v148_v36 }
  0xa5   :  { %v102_v37 = vpop.xlane.xlu0 %101 }
  0xa6   :  { %v156_v39 = vperm.slane %v102_v37, %v122_v59 }
  0xa8   :  { %v157_v44 = vsel %vm124_vm2, %v156_v39, %v155_v42 }
  0xa9   :  { %v159_v47 = vsel %vm158_vm4, %v157_v44, %v150_v43 }
  0xaa   :  { %v162_v48 = vsel %vm161_vm5, %v134_v46, %v159_v47 }
  0xab   :  { %344 = vmatmul.msk.f32.vlgmr.msra.gmra.mxu0 %vm167_vm6, %v162_v48 }
 0x128   :  { %v188_v50 = vpop.f32.mrf.mxu0 }
 0x129   :  { %v191_v51 = vmax.f32 %v188_v50, 0.0 }
 0x12b   :  { %346 = vmatmul.msk.f32.vlgmr.msra.gmra.mxu1 %vm193_vm7, %v191_v51 }
 0x1a8   :  { %v217_v55 = vpop.f32.mrf.mxu1 }
 0x1a9   :  { %v221_v56 = vrot.slane %v217_v55, 2 }
 0x1ab   :  { %v223_v57 = vadd.f32 %v221_v56, %v217_v55 }
 0x1ad   :  { %v347_v58 = vmul.f32 -1.442695, %v223_v57 }
 0x1af   :  { %360 = vpow2.f32 %v347_v58 }
 0x1b5   :  { %v361_v59 = vpop.eup %360 }
 0x1b6   :  { %v227_v60 = vadd.f32 1.0, %v361_v59 }
 0x1b8   :  { %362 = vrcp.f32 %v227_v60  ;;  %v239_v3 = vand.u32 2147483648, %v227_v60  ;;  %v237_v45 = vand.u32 2147483647, %v227_v60  ;;  %vm233_vm9 = vweird.f32 %v227_v60 }
 0x1ba   :  { %v240_v15 = vor.u32 1.1754944e-38, %v239_v3  ;;  %vm238_vm11 = vcmp.eq.f32.partialorder %v237_v45, 8.507059e+37 }
 0x1be   :  { %v363_v61 = vpop.eup %362 }
 0x1bf   :  { %v229_v62 = vmul.f32 %v363_v61, %v227_v60  ;;  %vm234_vm8 = vweird.f32 %v363_v61 }
 0x1c0   :  { %vm235_vm10 = vmor %vm233_vm9, %vm234_vm8 }
 0x1c1   :  { %v230_v63 = vsub.f32 1.0, %v229_v62 }
 0x1c3   :  { %v231_v7 = vmul.f32 %v363_v61, %v230_v63 }
 0x1c5   :  { %v232_v8 = vadd.f32 %v363_v61, %v231_v7 }
 0x1c7   :  { %v236_v16 = vsel %vm235_vm10, %v363_v61, %v232_v8 }
 0x1c8   :  { %v241_v17 = vsel %vm238_vm11, %v240_v15, %v236_v16 }
 0x1c9   :  { %v243_v22 = vperm.slane %v241_v17, 0  ;;  %v268_v24 = vperm.slane %v241_v17, 1 }
 0x1cb   :  { %260 = vperm.xlu0 %354, %v243_v22   ;;  %254 = vperm.xlu2 %353, %v243_v22  }
 0x1cc   :  { %248 = vperm.xlu1 %352, %v243_v22  }
 0x1d3   :  { %355 = vset.pattern.permute.xlu2 %v264_v23  ;;  %359 = vset.pattern.permute.xlu0 %v264_v23 }
 0x1d4   :  { %273 = vperm.xlu1 %352, %v268_v24  }
 0x1db   :  { %266 = vperm.xlu2 %355, %v243_v22  }
 0x1dc   :  { %357 = vset.pattern.permute.xlu1 %v258_v53 }
 0x1e3   :  { %356 = vset.pattern.permute.xlu2 %v252_v54 }
 0x1e4   :  { %285 = vperm.xlu1 %357, %v268_v24  }
 0x1eb   :  { %279 = vperm.xlu2 %356, %v268_v24  }
 0x1f3   :  { %358 = vset.pattern.permute.xlu2 %v264_v23 }
 0x1fb   :  { %291 = vperm.xlu2 %358, %v268_v24  }
 0x225   :  { %v255_v25 = vpop.permute.xlu2 %254 }
 0x226   :  { %v295_v26 = vmul.f32 %v255_v25, %v468_v11  ;;  %v296_v27 = vmul.f32 %v255_v25, %v470_v12 }
 0x228   :  { %311 = vst [vmem:[#allocation5 + $0x10] sm:$0xff] %v295_v26 }
 0x229   :  { %312 = vst [vmem:[#allocation5 + $0x18] sm:$0xff] %v296_v27 }
 0x235   :  { %v267_v28 = vpop.permute.xlu2 %266 }
 0x236   :  { %v299_v29 = vmul.f32 %v267_v28, %v486_v20  ;;  %v300_v30 = vmul.f32 %v267_v28, %v488_v21 }
 0x238   :  { %315 = vst [vmem:[#allocation5 + $0x30] sm:$0xff] %v299_v29 }
 0x239   :  { %316 = vst [vmem:[#allocation5 + $0x38] sm:$0xff] %v300_v30 }
 0x23d   :  { %v261_v31 = vpop.permute.xlu0 %260 }
 0x23e   :  { %v297_v32 = vmul.f32 %v261_v31, %v456_v5  ;;  %v298_v33 = vmul.f32 %v261_v31, %v458_v6  ;;  %v249_v34 = vpop.permute.xlu1 %248 }
 0x23f   :  { %v293_v35 = vmul.f32 %v249_v34, %v450_v2  ;;  %v294_v11 = vmul.f32 %v249_v34, %v454_v4 }
 0x240   :  { %313 = vst [vmem:[#allocation5 + $0x20] sm:$0xff] %v297_v32 }
 0x241   :  { %314 = vst [vmem:[#allocation5 + $0x28] sm:$0xff] %v298_v33 }
 0x242   :  { %309 = vst [vmem:[#allocation5] sm:$0xff] %v293_v35 }
 0x243   :  { %310 = vst [vmem:[#allocation5 + $0x8] sm:$0xff] %v294_v11 }
 0x245   :  { %v280_v12 = vpop.permute.xlu2 %279 }
 0x246   :  { %v303_v20 = vmul.f32 %v280_v12, %v464_v9  ;;  %v304_v21 = vmul.f32 %v280_v12, %v466_v10  ;;  %v274_v36 = vpop.permute.xlu1 %273 }
 0x247   :  { %v301_v37 = vmul.f32 %v274_v36, %v446_v0  ;;  %v302_v5 = vmul.f32 %v274_v36, %v448_v1 }
 0x248   :  { %319 = vst [vmem:[#allocation5 + $0x50] sm:$0xff] %v303_v20 }
 0x249   :  { %320 = vst [vmem:[#allocation5 + $0x58] sm:$0xff] %v304_v21 }
 0x24a   :  { %317 = vst [vmem:[#allocation5 + $0x40] sm:$0xff] %v301_v37 }
 0x24b   :  { %318 = vst [vmem:[#allocation5 + $0x48] sm:$0xff] %v302_v5 }
 0x255   :  { %v292_v2 = vpop.permute.xlu2 %291 }
 0x256   :  { %v307_v4 = vmul.f32 %v292_v2, %v482_v18  ;;  %v308_v6 = vmul.f32 %v292_v2, %v484_v19  ;;  %v286_v38 = vpop.permute.xlu1 %285 }
 0x257   :  { %v305_v0 = vmul.f32 %v286_v38, %v472_v13  ;;  %v306_v1 = vmul.f32 %v286_v38, %v474_v14 }
 0x258   :  { %323 = vst [vmem:[#allocation5 + $0x70] sm:$0xff] %v307_v4 }
 0x259   :  { %324 = vst [vmem:[#allocation5 + $0x78] sm:$0xff] %v308_v6 }
 0x25a   :  { %321 = vst [vmem:[#allocation5 + $0x60] sm:$0xff] %v305_v0 }
 0x25b   :  { %322 = vst [vmem:[#allocation5 + $0x68] sm:$0xff] %v306_v1 }
 0x25c   :  { %337 = dma.vmem_to_hbm [thread:$0]  %s330_s27, 2048, %s332_s30, [#allocation4], %s417_s17, %s417_s17, %s418_s18  }
 0x25d   :  { %414 = dma.done.wait [#allocation4], 2048  }
 0x25e   :  { %415 = vsyncadd [#allocation4], 4294965248 }
 0x25f   :  { %342 = vsyncpa [#allocation3], 1 }
 0x260   :  { %343 = vsyncpa [#allocation4], 1 }

</bundles_post_ra>
